<compile_context>
chip_gen: v7x
topology: tpu7x:2x2x1
jax: 0.10.0
libtpu: 0.0.40
codegen_flags: <defaults>
</compile_context>

<pallas_src>
import functools

import jax
import jax.numpy as jnp
import numpy as np
from jax.experimental import pallas as pl
from jax.experimental.pallas import tpu as pltpu

# --- module hyper-parameters (consistent with the torch __init__) -------------
D_FEATURE = 16                      # d_feature (latent channels)
D_IN = 3                            # d_in
D_HIDDEN = 32                       # d_hidden == W
N_BLOCKS = 2
N_LAYERS = 2
SKIPS = (4,)                        # skip_in (packing below assumes a single skip)
D_TOTAL = N_LAYERS * N_BLOCKS * 2   # D = 8  ->  D+1 = 9 layers
X_PE_DIM = D_IN                     # multires = 0 -> identity embedder
INPUT_CH = X_PE_DIM + D_FEATURE     # 3 + 16 = 19


def init_params(key):
    """Deterministic synthetic weights (reference format).  The skip layer's
    weight (acting on cat([h, feat])) is stored split as (W_h, W_feat); this is
    mathematically identical to a single (W + input_ch, out) matrix."""
    params = []
    for l in range(D_TOTAL + 1):
        out_dim = 9 if l == D_TOTAL else D_HIDDEN
        if l == 0:
            in_dims = (INPUT_CH,)
        elif l in SKIPS:
            in_dims = (D_HIDDEN, INPUT_CH)   # acts on [h, feat]
        else:
            in_dims = (D_HIDDEN,)
        total_in = sum(in_dims)
        ws = []
        for in_dim in in_dims:
            key, k = jax.random.split(key)
            ws.append(jax.random.normal(k, (in_dim, out_dim), jnp.float32)
                      * jnp.sqrt(2.0 / total_in))
        key, k = jax.random.split(key)
        b = 0.01 * jax.random.normal(k, (1, out_dim), jnp.float32)
        params.append((tuple(ws), b))
    return params


# ----------------------------- Pallas kernel ----------------------------------
def _deformation_kernel(x_ref, wx_ref, wh_ref, wlast_ref, bh_ref, blast_ref,
                        out_ref, *, skip, depth):
    """Lane-dense (batch-on-lanes) forward pass for one batch tile.

    x_ref     : (3, tile_b)  f32  transposed xyz points
    wx_ref    : (2, 32, 3)   f32  [layer0 x-weight^T, skip-layer x-weight^T]
    wh_ref    : (7, 32, 32)  f32  hidden weights^T for layers 1..7 (incl. skip h-part)
    wlast_ref : (9, 32)      f32  last-layer weight^T
    bh_ref    : (32, 8)      f32  hidden biases (t-contribution pre-folded for l=0,4)
    blast_ref : (9, 1)       f32  last-layer bias
    out_ref   : (3, tile_b)  f32  warped points (transposed)
    """
    x3 = x_ref[...]                               # (3, tile) f32

    # ---------------- MLP (f32 operands, f32 accumulation on the MXU) --------
    # layer 0 : relu(W0_x^T @ x + (b0 + t @ W0_t))
    h = jnp.dot(wx_ref[0], x3, preferred_element_type=jnp.float32)
    h = jnp.maximum(h + bh_ref[:, 0:1], 0.0)

    # hidden layers 1..depth-1 (statically unrolled; skip layer adds the x-part)
    for l in range(1, depth):
        acc = jnp.dot(wh_ref[l - 1], h, preferred_element_type=jnp.float32)
        if l == skip:
            acc = acc + jnp.dot(wx_ref[1], x3, preferred_element_type=jnp.float32)
        h = jnp.maximum(acc + bh_ref[:, l:l + 1], 0.0)

    # last layer (no activation): (9, tile)
    h9 = (jnp.dot(wlast_ref[...], h, preferred_element_type=jnp.float32)
          + blast_ref[...])

    # ---------------- SE(3) warp head (row-uniform math on (3, tile)) --------
    v, s, tv = h9[0:3, :], h9[3:6, :], h9[6:9, :]          # each (3, tile)

    # quaternion_log_to_exp (WXYZ): q = [cos|v|, v * sin|v| / max(|v|, eps)]
    vv = v * v
    theta = jnp.sqrt(vv[0:1, :] + vv[1:2, :] + vv[2:3, :])  # (1, tile)
    theta_c = jnp.maximum(theta, 1e-8)
    sinc = jnp.sin(theta) * pl.reciprocal(theta_c, approx=True)   # EUP, not VALU
    qw = jnp.cos(theta)                                     # (1, tile)

    qv = v * sinc                                            # (3, tile)
    p = x3 - s                                               # (3, tile)  x_pivot

    # cross products stay row-sliced: uv = qv x p, uuv = qv x uv
    q0, q1, q2 = qv[0:1, :], qv[1:2, :], qv[2:3, :]
    p0, p1, p2 = p[0:1, :], p[1:2, :], p[2:3, :]
    uv0 = q1 * p2 - q2 * p1
    uv1 = q2 * p0 - q0 * p2
    uv2 = q0 * p1 - q1 * p0
    uuv0 = q1 * uv2 - q2 * uv1
    uuv1 = q2 * uv0 - q0 * uv2
    uuv2 = q0 * uv1 - q1 * uv0
    uv = jnp.concatenate([uv0, uv1, uv2], axis=0)            # (3, tile)
    uuv = jnp.concatenate([uuv0, uuv1, uuv2], axis=0)        # (3, tile)

    # p' = p + 2*(qw*(qv x p) + qv x (qv x p));  x_warped = p' + s + t
    r = p + 2.0 * (qw * uv + uuv)                            # (3, tile)
    out_ref[...] = (r + s + tv).astype(out_ref.dtype)        # single block store


# ------------------------------- wrapper ---------------------------------------
def _round_up(n, m):
    return ((n + m - 1) // m) * m


def _pick_tile(B, tile_b):
    b128 = _round_up(max(B, 1), 128)
    t = _round_up(min(tile_b, b128), 128)
    # keep >= 2 grid steps whenever possible so both v7x TensorCores get work
    if b128 // t < 2 and b128 >= 256:
        t = _round_up((b128 + 1) // 2, 128)
    return t


def _prepare_params(params, t):
    """Fold the (constant-over-batch) latent-code contribution into the biases,
    transpose weights for the batch-on-lanes layout and pack them into a few
    stacked f32 operands."""
    skip = SKIPS[0]
    hi = jax.lax.Precision.HIGHEST   # avoid TPU default bf16 truncation here

    w0 = params[0][0][0]                                     # (19, 32)
    w0_x, w0_t = w0[:D_IN], w0[D_IN:]
    b0 = params[0][1] + jnp.dot(t, w0_t, precision=hi)       # (1, 32) folded

    w_sk_h, w_sk_f = params[skip][0]                         # (32,32), (19,32)
    w_sk_x, w_sk_t = w_sk_f[:D_IN], w_sk_f[D_IN:]
    b_sk = params[skip][1] + jnp.dot(t, w_sk_t, precision=hi)  # (1, 32) folded

    wx_T = jnp.stack([w0_x.T, w_sk_x.T]).astype(jnp.float32)   # (2, 32, 3)

    wh_list, b_cols = [], [b0[0]]
    for l in range(1, D_TOTAL):                              # layers 1..7
        if l == skip:
            wh_list.append(w_sk_h.T)
            b_cols.append(b_sk[0])
        else:
            wh_list.append(params[l][0][0].T)
            b_cols.append(params[l][1][0])
    wh_T = jnp.stack(wh_list).astype(jnp.float32)            # (7, 32, 32)
    w_last_T = params[D_TOTAL][0][0].T.astype(jnp.float32)   # (9, 32)

    b_hidden = jnp.stack(b_cols, axis=1).astype(jnp.float32)  # (32, 8)
    b_last = params[D_TOTAL][1].T.astype(jnp.float32)          # (9, 1)
    return wx_T, wh_T, w_last_T, b_hidden, b_last


def deformation_net_se3(t, x, params, *, tile_b=1024):
    """x: (B, 3) points, t: (1, d_feature) latent code -> (B, 3) warped points.

    tile_b is sweepable (1024-2048 per the perf review); 1024 keeps the
    (32, tile) hidden activations within the 64-vreg register file.
    """
    B = x.shape[0]
    tile = _pick_tile(B, tile_b)
    B_pad = _round_up(B, tile)
    grid_n = B_pad // tile

    # only x travels to the kernel; transpose so batch sits on the lane axis
    x_t = jnp.transpose(x.astype(jnp.float32))               # (3, B)
    if B_pad != B:
        x_t = jnp.pad(x_t, ((0, 0), (0, B_pad - B)))

    wx_T, wh_T, w_last_T, b_hidden, b_last = _prepare_params(params, t)

    kernel = functools.partial(_deformation_kernel, skip=SKIPS[0], depth=D_TOTAL)

    # weight/bias operands use constant index maps -> fetched once, never re-DMA'd
    in_specs = [
        pl.BlockSpec((3, tile), lambda i: (0, i)),            # x^T (lane-dense)
        pl.BlockSpec(wx_T.shape, lambda i: (0, 0, 0)),
        pl.BlockSpec(wh_T.shape, lambda i: (0, 0, 0)),
        pl.BlockSpec(w_last_T.shape, lambda i: (0, 0)),
        pl.BlockSpec(b_hidden.shape, lambda i: (0, 0)),
        pl.BlockSpec(b_last.shape, lambda i: (0, 0)),
    ]
    out_spec = pl.BlockSpec((3, tile), lambda i: (0, i))      # lane-dense output

    flops = 2 * B_pad * (2 * D_IN * D_HIDDEN
                         + (D_TOTAL - 1) * D_HIDDEN * D_HIDDEN
                         + D_HIDDEN * 9) + 60 * B_pad
    bytes_acc = B_pad * 24 + 34000
    cost = pl.CostEstimate(flops=int(flops), transcendentals=int(4 * B_pad),
                           bytes_accessed=int(bytes_acc))

    out_t = pl.pallas_call(
        kernel,
        out_shape=jax.ShapeDtypeStruct((3, B_pad), jnp.float32),
        grid_spec=pltpu.PrefetchScalarGridSpec(
            num_scalar_prefetch=0,
            grid=(grid_n,),
            in_specs=in_specs,
            out_specs=out_spec,
        ),
        compiler_params=pltpu.CompilerParams(
            dimension_semantics=("parallel",)),
        cost_estimate=cost,
    )(x_t, wx_T, wh_T, w_last_T, b_hidden, b_last)

    return jnp.transpose(out_t)[:B]                           # (B, 3)


# ------------------------- pure-JAX reference ----------------------------------
def deformation_net_se3_ref(t, x, params):
    """Torch-semantics reference in f32 (precision=HIGHEST so the XLA path does
    not silently truncate f32 matmuls to bf16 on TPU)."""
    B = x.shape[0]
    feat = jnp.concatenate([x, jnp.broadcast_to(t, (B, t.shape[-1]))], axis=-1)

    mm = functools.partial(jnp.dot, precision=jax.lax.Precision.HIGHEST,
                           preferred_element_type=jnp.float32)

    h = feat
    for l, (ws, b) in enumerate(params):
        if l in SKIPS:
            h = mm(h, ws[0]) + mm(feat, ws[1]) + b
        else:
            h = mm(h, ws[0]) + b
        if l != D_TOTAL:
            h = jnp.maximum(h, 0.0)
    v, s, tt = h[:, :3], h[:, 3:6], h[:, 6:9]
    theta = jnp.linalg.norm(v, axis=-1, keepdims=True)
    theta_c = jnp.maximum(theta, 1e-8)
    qw = jnp.cos(theta)
    qv = v * jnp.sin(theta) / theta_c
    p = x - s
    uv = jnp.cross(qv, p)
    uuv = jnp.cross(qv, uv)
    r = p + 2.0 * (qw * uv + uuv)
    return r + s + tt


if __name__ == "__main__":
    key = jax.random.PRNGKey(0)
    kp, kx, kt = jax.random.split(key, 3)

    params = init_params(kp)
    B = 200                                                  # exercises pad-to-tile path
    x = jax.random.normal(kx, (B, D_IN), jnp.float32)        # points
    t = jax.random.normal(kt, (1, D_FEATURE), jnp.float32)   # latent code

    out = jax.block_until_ready(deformation_net_se3(t, x, params))
    assert out.shape == (B, 3) and out.dtype == jnp.float32
    o = np.asarray(out)
    assert not np.any(np.isnan(o))

    ref = jax.block_until_ready(deformation_net_se3_ref(t, x, params))
    r = np.asarray(ref)
    diff = float(np.max(np.abs(o - r)))
    assert np.allclose(o, r, rtol=2e-2, atol=2e-2), \
        f"max abs diff vs f32 reference: {diff}"

    print("KERNEL_OK")
</pallas_src>

<mosaic_0001>
module attributes {stable_mosaic.version = 11 : i64} {
  func.func @_deformation_kernel(%arg0: i32, %arg1: memref<3x128xf32, #tpu.memory_space<vmem>>, %arg2: memref<2x32x3xf32, #tpu.memory_space<vmem>>, %arg3: memref<7x32x32xf32, #tpu.memory_space<vmem>>, %arg4: memref<9x32xf32, #tpu.memory_space<vmem>>, %arg5: memref<32x8xf32, #tpu.memory_space<vmem>>, %arg6: memref<9x1xf32, #tpu.memory_space<vmem>>, %arg7: memref<3x128xf32, #tpu.memory_space<vmem>>) attributes {dimension_semantics = [#tpu.dimension_semantics<parallel>], iteration_bounds = array<i64: 2>, scalar_prefetch = 0 : i64, scratch_operands = 0 : i64, tpu.core_type = #tpu.core_type<tc>, window_params = [{transform_indices = @transform_0, window_bounds = array<i64: 3, 128>}, {pipeline_mode = #tpu.pipeline_mode<synchronous>, transform_indices = @transform_1, window_bounds = array<i64: 2, 32, 3>}, {pipeline_mode = #tpu.pipeline_mode<synchronous>, transform_indices = @transform_2, window_bounds = array<i64: 7, 32, 32>}, {pipeline_mode = #tpu.pipeline_mode<synchronous>, transform_indices = @transform_3, window_bounds = array<i64: 9, 32>}, {pipeline_mode = #tpu.pipeline_mode<synchronous>, transform_indices = @transform_4, window_bounds = array<i64: 32, 8>}, {pipeline_mode = #tpu.pipeline_mode<synchronous>, transform_indices = @transform_5, window_bounds = array<i64: 9, 1>}, {transform_indices = @transform_6, window_bounds = array<i64: 3, 128>}]} {
    %c0 = arith.constant 0 : index
    %c0_0 = arith.constant 0 : index
    %0 = vector.load %arg1[%c0, %c0_0] : memref<3x128xf32, #tpu.memory_space<vmem>>, vector<3x128xf32>
    %c0_1 = arith.constant 0 : index
    %c0_2 = arith.constant 0 : index
    %c0_3 = arith.constant 0 : index
    %1 = vector.load %arg2[%c0_1, %c0_2, %c0_3] : memref<2x32x3xf32, #tpu.memory_space<vmem>>, vector<1x32x3xf32>
    %2 = vector.shape_cast %1 : vector<1x32x3xf32> to vector<32x3xf32>
    %cst = arith.constant dense<0.000000e+00> : vector<32x128xf32>
    %3 = tpu.matmul %2, %0, %cst {dimension_numbers = #tpu.dot_dimension_numbers<[1], [0], [0], [1], [0, 0, 1, 1], [], []>} : vector<32x3xf32>, vector<3x128xf32>, vector<32x128xf32> -> vector<32x128xf32>
    %c0_4 = arith.constant 0 : index
    %c0_5 = arith.constant 0 : index
    %4 = vector.load %arg5[%c0_4, %c0_5] : memref<32x8xf32, #tpu.memory_space<vmem>>, vector<32x1xf32>
    %5 = vector.broadcast %4 : vector<32x1xf32> to vector<32x128xf32>
    %6 = arith.addf %3, %5 : vector<32x128xf32>
    %cst_6 = arith.constant 0.000000e+00 : f32
    %7 = vector.broadcast %cst_6 : f32 to vector<32x128xf32>
    %8 = arith.maximumf %6, %7 : vector<32x128xf32>
    %c0_7 = arith.constant 0 : index
    %c0_8 = arith.constant 0 : index
    %c0_9 = arith.constant 0 : index
    %9 = vector.load %arg3[%c0_7, %c0_8, %c0_9] : memref<7x32x32xf32, #tpu.memory_space<vmem>>, vector<1x32x32xf32>
    %10 = vector.shape_cast %9 : vector<1x32x32xf32> to vector<32x32xf32>
    %cst_10 = arith.constant dense<0.000000e+00> : vector<32x128xf32>
    %11 = tpu.matmul %10, %8, %cst_10 {dimension_numbers = #tpu.dot_dimension_numbers<[1], [0], [0], [1], [0, 0, 1, 1], [], []>} : vector<32x32xf32>, vector<32x128xf32>, vector<32x128xf32> -> vector<32x128xf32>
    %c0_11 = arith.constant 0 : index
    %c1 = arith.constant 1 : index
    %12 = vector.load %arg5[%c0_11, %c1] : memref<32x8xf32, #tpu.memory_space<vmem>>, vector<32x1xf32>
    %13 = vector.broadcast %12 : vector<32x1xf32> to vector<32x128xf32>
    %14 = arith.addf %11, %13 : vector<32x128xf32>
    %cst_12 = arith.constant 0.000000e+00 : f32
    %15 = vector.broadcast %cst_12 : f32 to vector<32x128xf32>
    %16 = arith.maximumf %14, %15 : vector<32x128xf32>
    %c1_13 = arith.constant 1 : index
    %c0_14 = arith.constant 0 : index
    %c0_15 = arith.constant 0 : index
    %17 = vector.load %arg3[%c1_13, %c0_14, %c0_15] : memref<7x32x32xf32, #tpu.memory_space<vmem>>, vector<1x32x32xf32>
    %18 = vector.shape_cast %17 : vector<1x32x32xf32> to vector<32x32xf32>
    %cst_16 = arith.constant dense<0.000000e+00> : vector<32x128xf32>
    %19 = tpu.matmul %18, %16, %cst_16 {dimension_numbers = #tpu.dot_dimension_numbers<[1], [0], [0], [1], [0, 0, 1, 1], [], []>} : vector<32x32xf32>, vector<32x128xf32>, vector<32x128xf32> -> vector<32x128xf32>
    %c0_17 = arith.constant 0 : index
    %c2 = arith.constant 2 : index
    %20 = vector.load %arg5[%c0_17, %c2] : memref<32x8xf32, #tpu.memory_space<vmem>>, vector<32x1xf32>
    %21 = vector.broadcast %20 : vector<32x1xf32> to vector<32x128xf32>
    %22 = arith.addf %19, %21 : vector<32x128xf32>
    %cst_18 = arith.constant 0.000000e+00 : f32
    %23 = vector.broadcast %cst_18 : f32 to vector<32x128xf32>
    %24 = arith.maximumf %22, %23 : vector<32x128xf32>
    %c2_19 = arith.constant 2 : index
    %c0_20 = arith.constant 0 : index
    %c0_21 = arith.constant 0 : index
    %25 = vector.load %arg3[%c2_19, %c0_20, %c0_21] : memref<7x32x32xf32, #tpu.memory_space<vmem>>, vector<1x32x32xf32>
    %26 = vector.shape_cast %25 : vector<1x32x32xf32> to vector<32x32xf32>
    %cst_22 = arith.constant dense<0.000000e+00> : vector<32x128xf32>
    %27 = tpu.matmul %26, %24, %cst_22 {dimension_numbers = #tpu.dot_dimension_numbers<[1], [0], [0], [1], [0, 0, 1, 1], [], []>} : vector<32x32xf32>, vector<32x128xf32>, vector<32x128xf32> -> vector<32x128xf32>
    %c0_23 = arith.constant 0 : index
    %c3 = arith.constant 3 : index
    %28 = vector.load %arg5[%c0_23, %c3] : memref<32x8xf32, #tpu.memory_space<vmem>>, vector<32x1xf32>
    %29 = vector.broadcast %28 : vector<32x1xf32> to vector<32x128xf32>
    %30 = arith.addf %27, %29 : vector<32x128xf32>
    %cst_24 = arith.constant 0.000000e+00 : f32
    %31 = vector.broadcast %cst_24 : f32 to vector<32x128xf32>
    %32 = arith.maximumf %30, %31 : vector<32x128xf32>
    %c3_25 = arith.constant 3 : index
    %c0_26 = arith.constant 0 : index
    %c0_27 = arith.constant 0 : index
    %33 = vector.load %arg3[%c3_25, %c0_26, %c0_27] : memref<7x32x32xf32, #tpu.memory_space<vmem>>, vector<1x32x32xf32>
    %34 = vector.shape_cast %33 : vector<1x32x32xf32> to vector<32x32xf32>
    %cst_28 = arith.constant dense<0.000000e+00> : vector<32x128xf32>
    %35 = tpu.matmul %34, %32, %cst_28 {dimension_numbers = #tpu.dot_dimension_numbers<[1], [0], [0], [1], [0, 0, 1, 1], [], []>} : vector<32x32xf32>, vector<32x128xf32>, vector<32x128xf32> -> vector<32x128xf32>
    %c1_29 = arith.constant 1 : index
    %c0_30 = arith.constant 0 : index
    %c0_31 = arith.constant 0 : index
    %36 = vector.load %arg2[%c1_29, %c0_30, %c0_31] : memref<2x32x3xf32, #tpu.memory_space<vmem>>, vector<1x32x3xf32>
    %37 = vector.shape_cast %36 : vector<1x32x3xf32> to vector<32x3xf32>
    %cst_32 = arith.constant dense<0.000000e+00> : vector<32x128xf32>
    %38 = tpu.matmul %37, %0, %cst_32 {dimension_numbers = #tpu.dot_dimension_numbers<[1], [0], [0], [1], [0, 0, 1, 1], [], []>} : vector<32x3xf32>, vector<3x128xf32>, vector<32x128xf32> -> vector<32x128xf32>
    %39 = arith.addf %35, %38 : vector<32x128xf32>
    %c0_33 = arith.constant 0 : index
    %c4 = arith.constant 4 : index
    %40 = vector.load %arg5[%c0_33, %c4] : memref<32x8xf32, #tpu.memory_space<vmem>>, vector<32x1xf32>
    %41 = vector.broadcast %40 : vector<32x1xf32> to vector<32x128xf32>
    %42 = arith.addf %39, %41 : vector<32x128xf32>
    %cst_34 = arith.constant 0.000000e+00 : f32
    %43 = vector.broadcast %cst_34 : f32 to vector<32x128xf32>
    %44 = arith.maximumf %42, %43 : vector<32x128xf32>
    %c4_35 = arith.constant 4 : index
    %c0_36 = arith.constant 0 : index
    %c0_37 = arith.constant 0 : index
    %45 = vector.load %arg3[%c4_35, %c0_36, %c0_37] : memref<7x32x32xf32, #tpu.memory_space<vmem>>, vector<1x32x32xf32>
    %46 = vector.shape_cast %45 : vector<1x32x32xf32> to vector<32x32xf32>
    %cst_38 = arith.constant dense<0.000000e+00> : vector<32x128xf32>
    %47 = tpu.matmul %46, %44, %cst_38 {dimension_numbers = #tpu.dot_dimension_numbers<[1], [0], [0], [1], [0, 0, 1, 1], [], []>} : vector<32x32xf32>, vector<32x128xf32>, vector<32x128xf32> -> vector<32x128xf32>
    %c0_39 = arith.constant 0 : index
    %c5 = arith.constant 5 : index
    %48 = vector.load %arg5[%c0_39, %c5] : memref<32x8xf32, #tpu.memory_space<vmem>>, vector<32x1xf32>
    %49 = vector.broadcast %48 : vector<32x1xf32> to vector<32x128xf32>
    %50 = arith.addf %47, %49 : vector<32x128xf32>
    %cst_40 = arith.constant 0.000000e+00 : f32
    %51 = vector.broadcast %cst_40 : f32 to vector<32x128xf32>
    %52 = arith.maximumf %50, %51 : vector<32x128xf32>
    %c5_41 = arith.constant 5 : index
    %c0_42 = arith.constant 0 : index
    %c0_43 = arith.constant 0 : index
    %53 = vector.load %arg3[%c5_41, %c0_42, %c0_43] : memref<7x32x32xf32, #tpu.memory_space<vmem>>, vector<1x32x32xf32>
    %54 = vector.shape_cast %53 : vector<1x32x32xf32> to vector<32x32xf32>
    %cst_44 = arith.constant dense<0.000000e+00> : vector<32x128xf32>
    %55 = tpu.matmul %54, %52, %cst_44 {dimension_numbers = #tpu.dot_dimension_numbers<[1], [0], [0], [1], [0, 0, 1, 1], [], []>} : vector<32x32xf32>, vector<32x128xf32>, vector<32x128xf32> -> vector<32x128xf32>
    %c0_45 = arith.constant 0 : index
    %c6 = arith.constant 6 : index
    %56 = vector.load %arg5[%c0_45, %c6] : memref<32x8xf32, #tpu.memory_space<vmem>>, vector<32x1xf32>
    %57 = vector.broadcast %56 : vector<32x1xf32> to vector<32x128xf32>
    %58 = arith.addf %55, %57 : vector<32x128xf32>
    %cst_46 = arith.constant 0.000000e+00 : f32
    %59 = vector.broadcast %cst_46 : f32 to vector<32x128xf32>
    %60 = arith.maximumf %58, %59 : vector<32x128xf32>
    %c6_47 = arith.constant 6 : index
    %c0_48 = arith.constant 0 : index
    %c0_49 = arith.constant 0 : index
    %61 = vector.load %arg3[%c6_47, %c0_48, %c0_49] : memref<7x32x32xf32, #tpu.memory_space<vmem>>, vector<1x32x32xf32>
    %62 = vector.shape_cast %61 : vector<1x32x32xf32> to vector<32x32xf32>
    %cst_50 = arith.constant dense<0.000000e+00> : vector<32x128xf32>
    %63 = tpu.matmul %62, %60, %cst_50 {dimension_numbers = #tpu.dot_dimension_numbers<[1], [0], [0], [1], [0, 0, 1, 1], [], []>} : vector<32x32xf32>, vector<32x128xf32>, vector<32x128xf32> -> vector<32x128xf32>
    %c0_51 = arith.constant 0 : index
    %c7 = arith.constant 7 : index
    %64 = vector.load %arg5[%c0_51, %c7] : memref<32x8xf32, #tpu.memory_space<vmem>>, vector<32x1xf32>
    %65 = vector.broadcast %64 : vector<32x1xf32> to vector<32x128xf32>
    %66 = arith.addf %63, %65 : vector<32x128xf32>
    %cst_52 = arith.constant 0.000000e+00 : f32
    %67 = vector.broadcast %cst_52 : f32 to vector<32x128xf32>
    %68 = arith.maximumf %66, %67 : vector<32x128xf32>
    %c0_53 = arith.constant 0 : index
    %c0_54 = arith.constant 0 : index
    %69 = vector.load %arg4[%c0_53, %c0_54] : memref<9x32xf32, #tpu.memory_space<vmem>>, vector<9x32xf32>
    %cst_55 = arith.constant dense<0.000000e+00> : vector<9x128xf32>
    %70 = tpu.matmul %69, %68, %cst_55 {dimension_numbers = #tpu.dot_dimension_numbers<[1], [0], [0], [1], [0, 0, 1, 1], [], []>} : vector<9x32xf32>, vector<32x128xf32>, vector<9x128xf32> -> vector<9x128xf32>
    %c0_56 = arith.constant 0 : index
    %c0_57 = arith.constant 0 : index
    %71 = vector.load %arg6[%c0_56, %c0_57] : memref<9x1xf32, #tpu.memory_space<vmem>>, vector<9x1xf32>
    %72 = vector.broadcast %71 : vector<9x1xf32> to vector<9x128xf32>
    %73 = arith.addf %70, %72 : vector<9x128xf32>
    %74 = vector.extract_strided_slice %73 {offsets = [0, 0], sizes = [3, 128], strides = [1, 1]} : vector<9x128xf32> to vector<3x128xf32>
    %75 = vector.extract_strided_slice %73 {offsets = [3, 0], sizes = [3, 128], strides = [1, 1]} : vector<9x128xf32> to vector<3x128xf32>
    %76 = vector.extract_strided_slice %73 {offsets = [6, 0], sizes = [3, 128], strides = [1, 1]} : vector<9x128xf32> to vector<3x128xf32>
    %77 = arith.mulf %74, %74 : vector<3x128xf32>
    %78 = vector.extract_strided_slice %77 {offsets = [0, 0], sizes = [1, 128], strides = [1, 1]} : vector<3x128xf32> to vector<1x128xf32>
    %79 = vector.extract_strided_slice %77 {offsets = [1, 0], sizes = [1, 128], strides = [1, 1]} : vector<3x128xf32> to vector<1x128xf32>
    %80 = arith.addf %78, %79 : vector<1x128xf32>
    %81 = vector.extract_strided_slice %77 {offsets = [2, 0], sizes = [1, 128], strides = [1, 1]} : vector<3x128xf32> to vector<1x128xf32>
    %82 = arith.addf %80, %81 : vector<1x128xf32>
    %83 = math.sqrt %82 : vector<1x128xf32>
    %cst_58 = arith.constant 9.99999993E-9 : f32
    %84 = vector.broadcast %cst_58 : f32 to vector<1x128xf32>
    %85 = arith.maximumf %83, %84 : vector<1x128xf32>
    %86 = math.sin %83 : vector<1x128xf32>
    %87 = tpu.reciprocal %85 {approx = true} : vector<1x128xf32> -> vector<1x128xf32>
    %88 = arith.mulf %86, %87 : vector<1x128xf32>
    %89 = math.cos %83 : vector<1x128xf32>
    %90 = vector.broadcast %88 : vector<1x128xf32> to vector<3x128xf32>
    %91 = arith.mulf %74, %90 : vector<3x128xf32>
    %92 = arith.subf %0, %75 : vector<3x128xf32>
    %93 = vector.extract_strided_slice %91 {offsets = [0, 0], sizes = [1, 128], strides = [1, 1]} : vector<3x128xf32> to vector<1x128xf32>
    %94 = vector.extract_strided_slice %91 {offsets = [1, 0], sizes = [1, 128], strides = [1, 1]} : vector<3x128xf32> to vector<1x128xf32>
    %95 = vector.extract_strided_slice %91 {offsets = [2, 0], sizes = [1, 128], strides = [1, 1]} : vector<3x128xf32> to vector<1x128xf32>
    %96 = vector.extract_strided_slice %92 {offsets = [0, 0], sizes = [1, 128], strides = [1, 1]} : vector<3x128xf32> to vector<1x128xf32>
    %97 = vector.extract_strided_slice %92 {offsets = [1, 0], sizes = [1, 128], strides = [1, 1]} : vector<3x128xf32> to vector<1x128xf32>
    %98 = vector.extract_strided_slice %92 {offsets = [2, 0], sizes = [1, 128], strides = [1, 1]} : vector<3x128xf32> to vector<1x128xf32>
    %99 = arith.mulf %94, %98 : vector<1x128xf32>
    %100 = arith.mulf %95, %97 : vector<1x128xf32>
    %101 = arith.subf %99, %100 : vector<1x128xf32>
    %102 = arith.mulf %95, %96 : vector<1x128xf32>
    %103 = arith.mulf %93, %98 : vector<1x128xf32>
    %104 = arith.subf %102, %103 : vector<1x128xf32>
    %105 = arith.mulf %93, %97 : vector<1x128xf32>
    %106 = arith.mulf %94, %96 : vector<1x128xf32>
    %107 = arith.subf %105, %106 : vector<1x128xf32>
    %108 = arith.mulf %94, %107 : vector<1x128xf32>
    %109 = arith.mulf %95, %104 : vector<1x128xf32>
    %110 = arith.subf %108, %109 : vector<1x128xf32>
    %111 = arith.mulf %95, %101 : vector<1x128xf32>
    %112 = arith.mulf %93, %107 : vector<1x128xf32>
    %113 = arith.subf %111, %112 : vector<1x128xf32>
    %114 = arith.mulf %93, %104 : vector<1x128xf32>
    %115 = arith.mulf %94, %101 : vector<1x128xf32>
    %116 = arith.subf %114, %115 : vector<1x128xf32>
    %117 = tpu.concatenate %101, %104, %107 in 0 : vector<1x128xf32>, vector<1x128xf32>, vector<1x128xf32> -> vector<3x128xf32>
    %118 = tpu.concatenate %110, %113, %116 in 0 : vector<1x128xf32>, vector<1x128xf32>, vector<1x128xf32> -> vector<3x128xf32>
    %119 = vector.broadcast %89 : vector<1x128xf32> to vector<3x128xf32>
    %120 = arith.mulf %119, %117 : vector<3x128xf32>
    %121 = arith.addf %120, %118 : vector<3x128xf32>
    %cst_59 = arith.constant 2.000000e+00 : f32
    %122 = vector.broadcast %cst_59 : f32 to vector<3x128xf32>
    %123 = arith.mulf %122, %121 : vector<3x128xf32>
    %124 = arith.addf %92, %123 : vector<3x128xf32>
    %125 = arith.addf %124, %75 : vector<3x128xf32>
    %126 = arith.addf %125, %76 : vector<3x128xf32>
    %c0_60 = arith.constant 0 : index
    %c0_61 = arith.constant 0 : index
    %127 = vector.load %arg7[%c0_60, %c0_61] : memref<3x128xf32, #tpu.memory_space<vmem>>, vector<3x128xf32>
    tpu.vector_store %arg7[%c0_60, %c0_61], %126 {strides = array<i32>} : memref<3x128xf32, #tpu.memory_space<vmem>>, vector<3x128xf32>,
    return
  }
  func.func @transform_0(%arg0: i32) -> (i32, i32) {
    %c0_i32 = arith.constant 0 : i32
    %c0_i32_0 = arith.constant 0 : i32
    return %c0_i32, %arg0 : i32, i32
  }
  func.func @transform_1(%arg0: i32) -> (i32, i32, i32) {
    %c0_i32 = arith.constant 0 : i32
    %c0_i32_0 = arith.constant 0 : i32
    %c0_i32_1 = arith.constant 0 : i32
    %c0_i32_2 = arith.constant 0 : i32
    return %c0_i32, %c0_i32_0, %c0_i32_1 : i32, i32, i32
  }
  func.func @transform_2(%arg0: i32) -> (i32, i32, i32) {
    %c0_i32 = arith.constant 0 : i32
    %c0_i32_0 = arith.constant 0 : i32
    %c0_i32_1 = arith.constant 0 : i32
    %c0_i32_2 = arith.constant 0 : i32
    return %c0_i32, %c0_i32_0, %c0_i32_1 : i32, i32, i32
  }
  func.func @transform_3(%arg0: i32) -> (i32, i32) {
    %c0_i32 = arith.constant 0 : i32
    %c0_i32_0 = arith.constant 0 : i32
    %c0_i32_1 = arith.constant 0 : i32
    return %c0_i32, %c0_i32_0 : i32, i32
  }
  func.func @transform_4(%arg0: i32) -> (i32, i32) {
    %c0_i32 = arith.constant 0 : i32
    %c0_i32_0 = arith.constant 0 : i32
    %c0_i32_1 = arith.constant 0 : i32
    return %c0_i32, %c0_i32_0 : i32, i32
  }
  func.func @transform_5(%arg0: i32) -> (i32, i32) {
    %c0_i32 = arith.constant 0 : i32
    %c0_i32_0 = arith.constant 0 : i32
    %c0_i32_1 = arith.constant 0 : i32
    return %c0_i32, %c0_i32_0 : i32, i32
  }
  func.func @transform_6(%arg0: i32) -> (i32, i32) {
    %c0_i32 = arith.constant 0 : i32
    %c0_i32_0 = arith.constant 0 : i32
    return %c0_i32, %arg0 : i32, i32
  }
}

</mosaic_0001>

<bundles_post_ra>
// kernel: tpu_custom_call.1
= control target key start
LH: loop header
LB: loop body
LE: loop exit
PB: predicated region body
PF: predicated region fallthrough
CT: control target
= control target key end

     0   :  { %11 = vsyncpa [#allocation3], 0  ;;  %s2745_s0 = inlined_call_operand.vmem [shape: f32[3,256], index: 0, kind: input, shape index: {}]   ;;  %s2746_s1 = inlined_call_operand.vmem [shape: f32[2,32,3], index: 1, kind: input, shape index: {}]   ;;  %s2747_s2 = inlined_call_operand.hbm [shape: f32[7,32,32], index: 2, kind: input, shape index: {}]   ;;  %s2748_s3 = inlined_call_operand.vmem [shape: f32[9,32], index: 3, kind: input, shape index: {}]   ;;  %s2749_s4 = inlined_call_operand.vmem [shape: f32[32,8], index: 4, kind: input, shape index: {}]   ;;  %s2750_s5 = inlined_call_operand.vmem [shape: f32[9,1], index: 5, kind: input, shape index: {}]   ;;  %s2751_s6 = inlined_call_operand.hbm [shape: f32[3,256], index: 6, kind: output, shape index: {}]  }
   0x1   :  { %12 = vsyncpa [#allocation4], 0 }
   0x2   :  { %14 = vsyncpa [#allocation4 + $0x1], 0  ;;  %s2424_s21 = smov 0   ;;  %s2426_s22 = smov 0  }
   0x3   :  { %s2428_s23 = smov 0   ;;  %s2430_s24 = smov 0  }
   0x4 LB: > { %s2445_s25 = sadd.s32 4294967295, %s2369_s24   ;;  %s1850_s26 = sadd.s32 4294967294, %s2369_s24   ;;  %s2369_s24 = sphi %s2430_s24, %s2767_s24   ;;  %s2365_s23 = sphi %s2428_s23, %s2766_s23   ;;  %s2361_s22 = sphi %s2426_s22, %s2765_s22   ;;  %s2357_s21 = sphi %s2424_s21, %s2764_s21  }
   0x5   : > { %s2449_s27 = sadd.s32 1, %s2369_s24   ;;  %s158_s28 = sadd.s32 1, %s2365_s23 }
   0x6   : > { %s155_s29 = ssub.s32 %s2369_s24, %s2449_s27  ;;  %p168_p0 = scmp.ne.s32.totalorder %s2365_s23, %s2361_s22 }
   0x7   : > { %p156_p1 = scmp.eq.s32.totalorder %s155_s29, 0  ;;  %p169_p2 = scmp.eq.s32.totalorder %s2445_s25, 1 }
   0x8   : > { %p174_p3 = scmp.ne.s32.totalorder %s2361_s22, %s2357_s21  ;;  %p175_p4 = scmp.eq.s32.totalorder %s1850_s26, 1 }
   0x9   : > { %s2460_s30 = scalar_select %p156_p1, %s2365_s23, %s158_s28  }
   0xa   : > { %p2462_p5 = por %p169_p2, %p168_p0  ;;  %p2466_p6 = por %p175_p4, %p174_p3 }
   0xb   : > { %p1851_p7 = scmp.ge.s32.totalorder %s2369_s24, 1  ;;  %p182_p8 = scmp.lt.s32.totalorder %s2369_s24, 3 }
   0xc   : > { %s2755_s7 = scalar_select %p2462_p5, 1, 0 }
   0xd   : > { %s2756_s8 = scalar_select %p2466_p6, 1, 0 }
   0xe   : > { %p2752_p9 = scmp.eq.s32.totalorder %s2445_s25, 0  ;;  %p2473_p10 = pnand %p1851_p7, %p182_p8 }
   0xf   : > { %s2371_s10 = smov [#allocation2]   ;;  %s2275_s15 = scalar_lea.hbm %s2747_s2, 3584 }
  0x10   : > { %s2757_s9 = scalar_select %p2473_p10, 1, 0 }
  0x11   : > { %s197_s11 = sshll.u32 %s2371_s10, 4  ;;  %p2189_p11 = pneg %p2473_p10  ;;  %s198_s11 = int_to_ptr.vmem [resolvable:$true] %s197_s11 }
  0x12   : > { %p2276_p13 = scmp.ne.s32.totalorder %s2747_s2, %s2275_s15  ;;  %p2282_p3 = scmp.lt.u32.totalorder %s2275_s15, %s2747_s2 }
  0x13   : > { %p2481_p12 = pnand %p2752_p9, %p2189_p11 }
  0x15   : > { %p2277_p0 = pneg %p2481_p12 }
  0x17   : > { %p2278_p1 = pnand %p2277_p0, %p2276_p13 }
  0x19   : > { %p2279_p2 = pneg %p2278_p1 }
  0x1b   : > { %p2284_p4 = pnand %p2282_p3, %p2279_p2 }
  0x1d   : > { %2287 = shalt.err (!%p2284_p4)
}
  0x1e   : > { %s2288_s20 = scalar_lea.vmem %s198_s11, 3584  ;;  %p2296_p9 = scmp.lt.s32.totalorder %s198_s11, %s198_s11 }
  0x1f   : > { %p2289_p7 = scmp.ne.s32.totalorder %s198_s11, %s2288_s20  ;;  %p2297_p6 = scmp.lt.s32.totalorder %s2288_s20, %s2288_s20 }
  0x21   : > { %p2291_p8 = pnand %p2289_p7, %p2277_p0  ;;  %p2298_p5 = por %p2297_p6, %p2296_p9 }
  0x23   : > { %p2292_p11 = pneg %p2291_p8 }
  0x25   : > { %p2299_p10 = pnand %p2298_p5, %p2292_p11 }
  0x27   : > { %2302 = shalt.err (!%p2299_p10)
}
  0x28   : > { %s2372_s26 = smov 128   ;;  %s2373_s28 = smov 8  }
  0x29   : > { %2192 = dma.hbm_to_vmem [thread:$0]  (!%p2481_p12), %s2747_s2, 3584, %s198_s11, [#allocation3], %s2372_s26, %s2372_s26, %s2373_s28  }
  0x2a   : > { %p2759_p13 = scmp.ne.s32.totalorder %s2757_s9, 0 }
  0x2b   : > { %p2760_p1 = scmp.eq.s32.totalorder (!%p2759_p13), %s2445_s25, 0 }
  0x2c   : > { %229 = sbr.rel (%p2759_p13) target bundleno = 2240 (0x8c0), region = 44 }
  0x33   : > { %2348 = dma.done.wait (%p2760_p1), [#allocation3], 3584   ;;  %p2761_p0 = pmov %p2760_p1 }
  0x34   : > { %p258_p5 = scmp.lt.s32.totalorder %s2445_s25, 1  ;;  %v2374_v0 = vmov 0   ;;  %vm304_vm0 = vcmask 1042432   ;;  %vm291_vm1 = vcmask 23552   ;;  %v263_v2 = vld [vmem:[%s2746_s1] sm:$0xff]  ;;  %v264_v3 = vld [vmem:[%s2746_s1 + $0x8] sm:$0xff] }
  0x35   : > { %2350 = vsyncadd (%p2761_p0), [#allocation3], 4294963712  ;;  %2249 = vset.pattern.permute.xlu0 %v2374_v0  ;;  %2250 = vset.pattern.permute.xlu1 %v2374_v0  ;;  %v265_v4 = vld [vmem:[%s2746_s1 + $0x10] sm:$0xff]  ;;  %v2531_v5 = vld [vmem:[%s2749_s4] sm:$0xff]  ;;  %vm417_vm2 = vcmask 261120   ;;  %v2375_v11 = vmov 1  }
  0x36   : > { %s259_s12 = scalar_select %p258_p5, %s2445_s25, 1  ;;  %1988 = vmatprep.mubr.msk.f32.mxu0 %vm291_vm1, %v263_v2  ;;  %273 = vperm.xlu0 %2249, %v2531_v5   ;;  %v2539_v6 = vld [vmem:[%s2749_s4 + $0x10] sm:$0xff]  ;;  %v2546_v7 = vld [vmem:[%s2749_s4 + $0x8] sm:$0xff]  ;;  %v266_v8 = vld [vmem:[%s2746_s1 + $0x18] sm:$0xff]  ;;  %v2376_v34 = vmov 2   ;;  %v2377_v57 = vmov 3  }
  0x37   : > { %283 = vperm.xlu1 %2250, %v2539_v6   ;;  %v2555_v9 = vld [vmem:[%s2749_s4 + $0x18] sm:$0xff]  ;;  %v397_v10 = vld [vmem:[#allocation2] sm:$0xff]  ;;  %v398_v30 = vld [vmem:[#allocation2 + $0x8] sm:$0xff]  ;;  %s255_s17 = sand.u32 1, %s2361_s22   ;;  %s1911_s19 = sshll.u32 %s2445_s25, 6 }
  0x38   : > { %s1857_s13 = sshll.u32 %s259_s12, 2  ;;  %2002 = vmatprep.mubr.msk.f32.mxu1 %vm417_vm2, %v397_v10  ;;  %v399_v31 = vld [vmem:[#allocation2 + $0x10] sm:$0xff]  ;;  %v400_v32 = vld [vmem:[#allocation2 + $0x18] sm:$0xff]  ;;  %v520_v33 = vld [vmem:[#allocation2 + $0x20] sm:$0xff]  ;;  %s1856_s18 = sshll.u32 %s255_s17, 2 }
  0x39   : > { %s261_s9 = scalar_lea.vmem %s2745_s0, %s1857_s13  ;;  %v521_v53 = vld [vmem:[#allocation2 + $0x28] sm:$0xff]  ;;  %v522_v54 = vld [vmem:[#allocation2 + $0x30] sm:$0xff]  ;;  %v523_v55 = vld [vmem:[#allocation2 + $0x38] sm:$0xff]  ;;  %s257_s20 = scalar_lea.vmem [#allocation5], %s1856_s18 }
  0x3a   : > { %v2514_v1 = vld [vmem:[%s261_s9] sm:$0x7]  ;;  %278 = vperm.xlu0 %2249, %v2546_v7   ;;  %s1779_s26 = sshll.u32 %s257_s20, 4  ;;  %s2703_s10 = scalar_lea.hbm %s2751_s6, %s1911_s19  ;;  %s2705_s26 = int_to_ptr.vmem [resolvable:$true] %s1779_s26 }
  0x3b   : > { %1986 = vmatprep.subr.msk.mxu0 %vm304_vm0, %v2514_v1  ;;  %288 = vperm.xlu1 %2250, %v2555_v9   ;;  %v642_v56 = vld [vmem:[#allocation2 + $0x40] sm:$0xff]  ;;  %s1766_s25 = scalar_lea.sflag [#allocation4], %s255_s17  ;;  %s2303_s12 = scalar_lea.vmem %s2705_s26, 64 }
  0x3c   : > { %1987 = vmatpush3.msk.msra.mxu0 %vm304_vm0, %v2514_v1  ;;  %p2304_p6 = scmp.ne.s32.totalorder %s2705_s26, %s2303_s12  ;;  %p2762_p9 = scmp.ne.s32.totalorder %s2755_s7, 0 }
  0x3d   : > { %1989 = vmatmul.mubr.msk.f32.vlgmr.msra.gmra.mrb[0].mxu0 %vm291_vm1, %v264_v3  ;;  %s2388_s13 = smov [#allocation5]  }
  0x3e   : > { %1991 = vmatprep.mubr.msk.f32.mxu0 %vm291_vm1, %v265_v4  ;;  %2251 = vset.pattern.permute.xlu0 %v2375_v11  ;;  %p2305_p10 = pnand %p2304_p6, %p2762_p9  ;;  %s2307_s11 = sshll.u32 %s2388_s13, 4  ;;  %s2308_s11 = int_to_ptr.vmem [resolvable:$false] %s2307_s11 }
  0x3f   : > { %2252 = vset.pattern.permute.xlu1 %v2375_v11  ;;  %402 = vperm.xlu0 %2251, %v2531_v5   ;;  %s2309_s14 = scalar_lea.vmem %s2308_s11, 128  ;;  %p2310_p2 = scmp.lt.s32.totalorder %s2705_s26, %s2308_s11 }
  0x40   : > { %406 = vperm.xlu1 %2252, %v2546_v7   ;;  %p2306_p12 = pneg %p2305_p10  ;;  %p2311_p3 = scmp.lt.s32.totalorder %s2309_s14, %s2303_s12 }
  0x41   : > { %1992 = vmatmul.mubr.msk.f32.gmra.mrb[2].mxu0 %vm291_vm1, %v266_v8 }
  0x42   : > { %2016 = vmatprep.mubr.msk.f32.mxu0 %vm417_vm2, %v520_v33  ;;  %p2312_p4 = por %p2311_p3, %p2310_p2 }
  0x43   : > { %414 = vperm.xlu0 %2251, %v2555_v9  }
  0x44   : > { %410 = vperm.xlu1 %2252, %v2539_v6   ;;  %p2313_p7 = pnand %p2312_p4, %p2306_p12 }
  0x47   : > { %2254 = vset.pattern.permute.xlu0 %v2376_v34 }
  0x48   : > { %2253 = vset.pattern.permute.xlu1 %v2376_v34  ;;  %529 = vperm.xlu0 %2254, %v2546_v7  }
  0x49   : > { %525 = vperm.xlu1 %2253, %v2531_v5  }
  0x4c   : > { %2255 = vset.pattern.permute.xlu0 %v2377_v57 }
  0x4d   : > { %533 = vperm.xlu1 %2253, %v2539_v6   ;;  %647 = vperm.xlu0 %2255, %v2531_v5  }
  0x51   : > { %537 = vperm.xlu1 %2253, %v2555_v9   ;;  %659 = vperm.xlu0 %2255, %v2555_v9  }
  0x55   : > { %2256 = vset.pattern.permute.xlu1 %v2377_v57 }
  0x56   : > { %651 = vperm.xlu1 %2256, %v2546_v7  }
  0x5a   : > { %655 = vperm.xlu1 %2256, %v2539_v6  }
  0xb5   : > { %v274_v12 = vpop.permute.xlu0 %273 }
  0xb6   : > { %v284_v13 = vpop.permute.xlu1 %283 }
  0xb9   : > { %v279_v14 = vpop.permute.xlu0 %278 }
  0xba   : > { %v289_v20 = vpop.permute.xlu1 %288 }
  0xbe   : > { %v403_v35 = vpop.permute.xlu0 %402 }
  0xbf   : > { %v407_v36 = vpop.permute.xlu1 %406 }
  0xc2   : > { %v415_v42 = vpop.permute.xlu0 %414 }
  0xc3   : > { %v411_v45 = vpop.permute.xlu1 %410 }
  0xc7   : > { %v530_v60 = vpop.permute.xlu0 %529 }
  0xc8   : > { %v526_v58 = vpop.permute.xlu1 %525 }
  0xcc   : > { %v534_v59 = vpop.permute.xlu1 %533 }
  0xd0   : > { %v538_v4 = vpop.permute.xlu1 %537 }
 0x110   : > { %v1990_v15 = vpop.f32.mrb[0].mxu0 }
 0x111   : > { %v380_v16 = vadd.f32 %v1990_v15, %v279_v14  ;;  %v374_v17 = vpop.f32.mrb[1].mxu0 }
 0x112   : > { %v375_v18 = vadd.f32 %v374_v17, %v274_v12 }
 0x113   : > { %v394_v19 = vmax.f32 %v380_v16, 0.0 }
 0x114   : > { %v393_v21 = vmax.f32 %v375_v18, 0.0  ;;  %v1993_v22 = vpop.f32.mrb[2].mxu0  ;;  %v643_v18 = vld [vmem:[#allocation2 + $0x48] sm:$0xff] }
 0x115   : > { %v390_v23 = vadd.f32 %v1993_v22, %v289_v20  ;;  %v384_v24 = vpop.f32.mrb[3].mxu0  ;;  %v645_v20 = vld [vmem:[#allocation2 + $0x58] sm:$0xff]  ;;  %v1876_v22 = vld [vmem:[%s2746_s1 + $0x28] sm:$0xff] }
 0x116   : > { %v385_v25 = vadd.f32 %v384_v24, %v284_v13  ;;  %v2111_v26 = vpack.c.bf16 %v394_v19, %v393_v21  ;;  %v644_v19 = vld [vmem:[#allocation2 + $0x50] sm:$0xff]  ;;  %v1875_v21 = vld [vmem:[%s2746_s1 + $0x20] sm:$0xff]  ;;  %v1878_v24 = vld [vmem:[%s2746_s1 + $0x38] sm:$0xff] }
 0x117   : > { %v396_v27 = vmax.f32 %v390_v23, 0.0  ;;  %v1877_v23 = vld [vmem:[%s2746_s1 + $0x30] sm:$0xff] }
 0x118   : > { %v395_v28 = vmax.f32 %v385_v25, 0.0  ;;  %2112 = vmatprep.subr.bf16.mxu1 %v2111_v26  ;;  %v764_v25 = vld [vmem:[#allocation2 + $0x60] sm:$0xff] }
 0x119   : > { %2114 = vmatpush3.bf16.msra.mxu1 %v2111_v26  ;;  %v2378_v26 = vmov 4  }
 0x11a   : > { %v2115_v29 = vpack.c.bf16 %v396_v27, %v395_v28  ;;  %2257 = vset.pattern.permute.xlu1 %v2378_v26  ;;  %2258 = vset.pattern.permute.xlu0 %v2378_v26  ;;  %v648_v27 = vpop.permute.xlu0 %647  ;;  %v652_v28 = vpop.permute.xlu1 %651 }
 0x11b   : > { %968 = vperm.xlu1 %2257, %v2531_v5   ;;  %972 = vperm.xlu0 %2258, %v2546_v7  }
 0x11c   : > { %2116 = vmatprep.subr.bf16.mxu1 %v2115_v29 }
 0x11d   : > { %2118 = vmatpush3.bf16.msra.mxu1 %v2115_v29 }
 0x11e   : > { %v660_v34 = vpop.permute.xlu0 %659 }
 0x11f   : > { %976 = vperm.xlu1 %2257, %v2539_v6  }
 0x120   : > { %2003 = vmatmul.mubr.msk.f32.vlgmr.msra.gmra.mrb[0].mxu1 %vm417_vm2, %v398_v30 }
 0x121   : > { %2005 = vmatprep.mubr.msk.f32.mxu1 %vm417_vm2, %v399_v31 }
 0x123   : > { %980 = vperm.xlu1 %2257, %v2555_v9  }
 0x124   : > { %2006 = vmatmul.mubr.msk.f32.gmra.mrb[2].mxu1 %vm417_vm2, %v400_v32 }
 0x125   : > { %2030 = vmatprep.mubr.msk.f32.mxu1 %vm417_vm2, %v642_v56 }
 0x1f3   : > { %v2004_v37 = vpop.f32.mrb[0].mxu1 }
 0x1f4   : > { %v502_v38 = vadd.f32 %v2004_v37, %v407_v36  ;;  %v496_v39 = vpop.f32.mrb[1].mxu1  ;;  %v656_v37 = vpop.permute.xlu1 %655 }
 0x1f5   : > { %v497_v40 = vadd.f32 %v496_v39, %v403_v35 }
 0x1f6   : > { %v516_v41 = vmax.f32 %v502_v38, 0.0 }
 0x1f7   : > { %v515_v43 = vmax.f32 %v497_v40, 0.0  ;;  %v2007_v44 = vpop.f32.mrb[2].mxu1 }
 0x1f8   : > { %v512_v46 = vadd.f32 %v2007_v44, %v415_v42  ;;  %v506_v47 = vpop.f32.mrb[3].mxu1 }
 0x1f9   : > { %v2119_v48 = vpack.c.bf16 %v516_v41, %v515_v43  ;;  %v507_v49 = vadd.f32 %v506_v47, %v411_v45  ;;  %v765_v45 = vld [vmem:[#allocation2 + $0x68] sm:$0xff]  ;;  %v767_v47 = vld [vmem:[#allocation2 + $0x78] sm:$0xff] }
 0x1fa   : > { %v518_v50 = vmax.f32 %v512_v46, 0.0  ;;  %v766_v46 = vld [vmem:[#allocation2 + $0x70] sm:$0xff] }
 0x1fb   : > { %v517_v51 = vmax.f32 %v507_v49, 0.0  ;;  %2120 = vmatprep.subr.bf16.mxu0 %v2119_v48  ;;  %v2379_v49 = vmov 5  }
 0x1fc   : > { %2122 = vmatpush3.bf16.msra.mxu0 %v2119_v48  ;;  %v992_v48 = vld [vmem:[#allocation2 + $0x80] sm:$0xff]  ;;  %2260 = vset.pattern.permute.xlu1 %v2379_v49 }
 0x1fd   : > { %v2123_v52 = vpack.c.bf16 %v518_v50, %v517_v51  ;;  %2259 = vset.pattern.permute.xlu0 %v2379_v49  ;;  %1001 = vperm.xlu1 %2260, %v2546_v7   ;;  %v969_v50 = vpop.permute.xlu1 %968 }
 0x1fe   : > { %997 = vperm.xlu0 %2259, %v2531_v5  }
 0x1ff   : > { %2124 = vmatprep.subr.bf16.mxu0 %v2123_v52 }
 0x200   : > { %2126 = vmatpush3.bf16.msra.mxu0 %v2123_v52  ;;  %v973_v52 = vpop.permute.xlu0 %972 }
 0x201   : > { %2036 = vmatprep.subr.msk.mxu0 %vm304_vm0, %v2514_v1  ;;  %1005 = vperm.xlu1 %2260, %v2539_v6   ;;  %v977_v51 = vpop.permute.xlu1 %976 }
 0x202   : > { %1009 = vperm.xlu0 %2259, %v2555_v9  }
 0x203   : > { %2017 = vmatmul.mubr.msk.f32.vlgmr.msra.gmra.mrb[4].mxu0 %vm417_vm2, %v521_v53 }
 0x204   : > { %2019 = vmatprep.mubr.msk.f32.mxu0 %vm417_vm2, %v522_v54  ;;  %2037 = vmatpush3.msk.msra.mxu0 %vm304_vm0, %v2514_v1 }
 0x207   : > { %2020 = vmatmul.mubr.msk.f32.gmra.mrb[6].mxu0 %vm417_vm2, %v523_v55 }
 0x208   : > { %2038 = vmatprep.mubr.msk.f32.mxu0 %vm291_vm1, %v1875_v21 }
 0x20b   : > { %2039 = vmatmul.mubr.msk.f32.vlgmr.msra.gmra.mrb[8].mxu0 %vm291_vm1, %v1876_v22 }
 0x20c   : > { %2041 = vmatprep.mubr.msk.f32.mxu0 %vm291_vm1, %v1877_v23 }
 0x20f   : > { %2042 = vmatmul.mubr.msk.f32.gmra.mrb[10].mxu0 %vm291_vm1, %v1878_v24 }
 0x210   : > { %2052 = vmatprep.mubr.msk.f32.mxu0 %vm417_vm2, %v764_v25 }
 0x2d6   : > { %v2018_v61 = vpop.f32.mrb[4].mxu0 }
 0x2d7   : > { %v624_v62 = vadd.f32 %v2018_v61, %v530_v60  ;;  %v618_v63 = vpop.f32.mrb[5].mxu0 }
 0x2d8   : > { %v619_v2 = vadd.f32 %v618_v63, %v526_v58  ;;  %v981_v58 = vpop.permute.xlu1 %980 }
 0x2d9   : > { %v638_v3 = vmax.f32 %v624_v62, 0.0 }
 0x2da   : > { %v637_v8 = vmax.f32 %v619_v2, 0.0  ;;  %v2021_v10 = vpop.f32.mrb[6].mxu0 }
 0x2db   : > { %v634_v11 = vadd.f32 %v2021_v10, %v538_v4  ;;  %v628_v12 = vpop.f32.mrb[7].mxu0  ;;  %v993_v10 = vld [vmem:[#allocation2 + $0x88] sm:$0xff] }
 0x2dc   : > { %v2127_v13 = vpack.c.bf16 %v638_v3, %v637_v8  ;;  %v629_v14 = vadd.f32 %v628_v12, %v534_v59  ;;  %v995_v12 = vld [vmem:[#allocation2 + $0x98] sm:$0xff] }
 0x2dd   : > { %v640_v15 = vmax.f32 %v634_v11, 0.0  ;;  %v994_v11 = vld [vmem:[#allocation2 + $0x90] sm:$0xff] }
 0x2de   : > { %v639_v16 = vmax.f32 %v629_v14, 0.0  ;;  %2128 = vmatprep.subr.bf16.mxu1 %v2127_v13  ;;  %v2380_v14 = vmov 6  }
 0x2df   : > { %2130 = vmatpush3.bf16.msra.mxu1 %v2127_v13  ;;  %v1114_v13 = vld [vmem:[#allocation2 + $0xa0] sm:$0xff]  ;;  %2261 = vset.pattern.permute.xlu1 %v2380_v14 }
 0x2e0   : > { %v2131_v17 = vpack.c.bf16 %v640_v15, %v639_v16  ;;  %2262 = vset.pattern.permute.xlu0 %v2380_v14  ;;  %1119 = vperm.xlu1 %2261, %v2531_v5   ;;  %v998_v15 = vpop.permute.xlu0 %997  ;;  %v1002_v16 = vpop.permute.xlu1 %1001 }
 0x2e1   : > { %1123 = vperm.xlu0 %2262, %v2546_v7  }
 0x2e2   : > { %2132 = vmatprep.subr.bf16.mxu1 %v2131_v17 }
 0x2e3   : > { %2134 = vmatpush3.bf16.msra.mxu1 %v2131_v17 }
 0x2e4   : > { %1127 = vperm.xlu1 %2261, %v2539_v6   ;;  %v1010_v22 = vpop.permute.xlu0 %1009  ;;  %v1006_v25 = vpop.permute.xlu1 %1005 }
 0x2e6   : > { %2031 = vmatmul.mubr.msk.f32.vlgmr.msra.gmra.mrb[4].mxu1 %vm417_vm2, %v643_v18 }
 0x2e7   : > { %2033 = vmatprep.mubr.msk.f32.mxu1 %vm417_vm2, %v644_v19 }
 0x2e8   : > { %1131 = vperm.xlu1 %2261, %v2555_v9  }
 0x2ea   : > { %2034 = vmatmul.mubr.msk.f32.gmra.mrb[6].mxu1 %vm417_vm2, %v645_v20 }
 0x2eb   : > { %2066 = vmatprep.mubr.msk.f32.mxu1 %vm417_vm2, %v992_v48 }
 0x3b9   : > { %v2032_v29 = vpop.f32.mrb[4].mxu1 }
 0x3ba   : > { %v746_v30 = vadd.f32 %v2032_v29, %v652_v28  ;;  %v740_v31 = vpop.f32.mrb[5].mxu1 }
 0x3bb   : > { %v741_v32 = vadd.f32 %v740_v31, %v648_v27 }
 0x3bc   : > { %v760_v33 = vmax.f32 %v746_v30, 0.0 }
 0x3bd   : > { %v759_v35 = vmax.f32 %v741_v32, 0.0  ;;  %v2035_v36 = vpop.f32.mrb[6].mxu1 }
 0x3be   : > { %v756_v38 = vadd.f32 %v2035_v36, %v660_v34  ;;  %v750_v39 = vpop.f32.mrb[7].mxu1  ;;  %v1116_v34 = vld [vmem:[#allocation2 + $0xb0] sm:$0xff]  ;;  %v1236_v36 = vld [vmem:[#allocation2 + $0xc0] sm:$0xff] }
 0x3bf   : > { %v2135_v40 = vpack.c.bf16 %v760_v33, %v759_v35  ;;  %v751_v41 = vadd.f32 %v750_v39, %v656_v37  ;;  %v1115_v33 = vld [vmem:[#allocation2 + $0xa8] sm:$0xff]  ;;  %v1117_v35 = vld [vmem:[#allocation2 + $0xb8] sm:$0xff]  ;;  %v2381_v37 = vmov 7  }
 0x3c0   : > { %v762_v42 = vmax.f32 %v756_v38, 0.0  ;;  %2264 = vset.pattern.permute.xlu1 %v2381_v37  ;;  %2263 = vset.pattern.permute.xlu0 %v2381_v37  ;;  %v1120_v38 = vpop.permute.xlu1 %1119 }
 0x3c1   : > { %v761_v43 = vmax.f32 %v751_v41, 0.0  ;;  %2136 = vmatprep.subr.bf16.mxu0 %v2135_v40  ;;  %1245 = vperm.xlu1 %2264, %v2546_v7  }
 0x3c2   : > { %2138 = vmatpush3.bf16.msra.mxu0 %v2135_v40  ;;  %1241 = vperm.xlu0 %2263, %v2531_v5   ;;  %v1124_v40 = vpop.permute.xlu0 %1123 }
 0x3c3   : > { %v2139_v44 = vpack.c.bf16 %v762_v42, %v761_v43 }
 0x3c4   : > { %v1128_v39 = vpop.permute.xlu1 %1127 }
 0x3c5   : > { %2140 = vmatprep.subr.bf16.mxu0 %v2139_v44  ;;  %1249 = vperm.xlu1 %2264, %v2539_v6  }
 0x3c6   : > { %2142 = vmatpush3.bf16.msra.mxu0 %v2139_v44  ;;  %1253 = vperm.xlu0 %2263, %v2555_v9  }
 0x3c9   : > { %2053 = vmatmul.mubr.msk.f32.vlgmr.msra.gmra.mrb[8].mxu0 %vm417_vm2, %v765_v45  ;;  %2265 = vset.pattern.permute.xlu1 %v2374_v0 }
 0x3ca   : > { %2055 = vmatprep.mubr.msk.f32.mxu0 %vm417_vm2, %v766_v46  ;;  %2266 = vset.pattern.permute.xlu0 %v2374_v0  ;;  %v1132_v46 = vpop.permute.xlu1 %1131 }
 0x3cd   : > { %2056 = vmatmul.mubr.msk.f32.gmra.mrb[10].mxu0 %vm417_vm2, %v767_v47 }
 0x3ce   : > { %2094 = vmatprep.mubr.msk.f32.mxu0 %vm417_vm2, %v1236_v36 }
 0x49c   : > { %v2054_v53 = vpop.f32.mrb[8].mxu0 }
 0x49d   : > { %v984_v54 = vadd.f32 %v2054_v53, %v973_v52  ;;  %v948_v55 = vpop.f32.mrb[9].mxu0  ;;  %v1238_v52 = vld [vmem:[#allocation2 + $0xd0] sm:$0xff]  ;;  %v1239_v53 = vld [vmem:[#allocation2 + $0xd8] sm:$0xff] }
 0x49e   : > { %v983_v56 = vadd.f32 %v969_v50, %v948_v55  ;;  %v1359_v55 = vld [vmem:[%s2750_s5] sm:$0xff] }
 0x49f   : > { %v988_v57 = vmax.f32 %v984_v54, 0.0  ;;  %v1357_v54 = vld [vmem:[%s2748_s3] sm:$0xff]  ;;  %1363 = vperm.xlu1 %2265, %v1359_v55  }
 0x4a0   : > { %v987_v59 = vmax.f32 %v983_v56, 0.0  ;;  %v2057_v60 = vpop.f32.mrb[10].mxu0  ;;  %v1360_v56 = vld [vmem:[%s2750_s5 + $0x8] sm:$0x1] }
 0x4a1   : > { %v986_v61 = vadd.f32 %v2057_v60, %v981_v58  ;;  %v958_v62 = vpop.f32.mrb[11].mxu0  ;;  %1368 = vperm.xlu0 %2266, %v1360_v56   ;;  %v1246_v58 = vpop.permute.xlu1 %1245 }
 0x4a2   : > { %v2143_v63 = vpack.c.bf16 %v988_v57, %v987_v59  ;;  %v985_v2 = vadd.f32 %v977_v51, %v958_v62  ;;  %v1237_v51 = vld [vmem:[#allocation2 + $0xc8] sm:$0xff]  ;;  %v1242_v57 = vpop.permute.xlu0 %1241 }
 0x4a3   : > { %v990_v3 = vmax.f32 %v986_v61, 0.0 }
 0x4a4   : > { %v989_v4 = vmax.f32 %v985_v2, 0.0  ;;  %2144 = vmatprep.subr.bf16.mxu1 %v2143_v63 }
 0x4a5   : > { %2146 = vmatpush3.bf16.msra.mxu1 %v2143_v63 }
 0x4a6   : > { %v2147_v8 = vpack.c.bf16 %v990_v3, %v989_v4  ;;  %v1254_v2 = vpop.permute.xlu0 %1253 }
 0x4a8   : > { %2148 = vmatprep.subr.bf16.mxu1 %v2147_v8 }
 0x4a9   : > { %2150 = vmatpush3.bf16.msra.mxu1 %v2147_v8  ;;  %v1250_v8 = vpop.permute.xlu1 %1249 }
 0x4ac   : > { %2067 = vmatmul.mubr.msk.f32.vlgmr.msra.gmra.mrb[8].mxu1 %vm417_vm2, %v993_v10 }
 0x4ad   : > { %2069 = vmatprep.mubr.msk.f32.mxu1 %vm417_vm2, %v994_v11 }
 0x4b0   : > { %2070 = vmatmul.mubr.msk.f32.gmra.mrb[10].mxu1 %vm417_vm2, %v995_v12 }
 0x4b1   : > { %2080 = vmatprep.mubr.msk.f32.mxu1 %vm417_vm2, %v1114_v13 }
 0x57f   : > { %v2068_v17 = vpop.f32.mrb[8].mxu1 }
 0x580   : > { %v1096_v18 = vadd.f32 %v2068_v17, %v1002_v16  ;;  %v1090_v19 = vpop.f32.mrb[9].mxu1  ;;  %v1358_v17 = vld [vmem:[%s2748_s3 + $0x8] sm:$0x1] }
 0x581   : > { %v1091_v20 = vadd.f32 %v1090_v19, %v998_v15 }
 0x582   : > { %v1110_v21 = vmax.f32 %v1096_v18, 0.0  ;;  %v1364_v18 = vpop.permute.xlu1 %1363 }
 0x583   : > { %v1109_v23 = vmax.f32 %v1091_v20, 0.0  ;;  %v2071_v24 = vpop.f32.mrb[10].mxu1 }
 0x584   : > { %v1106_v26 = vadd.f32 %v2071_v24, %v1010_v22  ;;  %v1100_v27 = vpop.f32.mrb[11].mxu1 }
 0x585   : > { %v2151_v28 = vpack.c.bf16 %v1110_v21, %v1109_v23  ;;  %v1101_v29 = vadd.f32 %v1100_v27, %v1006_v25 }
 0x586   : > { %v1112_v30 = vmax.f32 %v1106_v26, 0.0 }
 0x587   : > { %v1111_v31 = vmax.f32 %v1101_v29, 0.0  ;;  %2152 = vmatprep.subr.bf16.mxu1 %v2151_v28 }
 0x588   : > { %2154 = vmatpush3.bf16.msra.mxu1 %v2151_v28 }
 0x589   : > { %v2155_v32 = vpack.c.bf16 %v1112_v30, %v1111_v31 }
 0x58b   : > { %2156 = vmatprep.subr.bf16.mxu1 %v2155_v32 }
 0x58c   : > { %2158 = vmatpush3.bf16.msra.mxu1 %v2155_v32 }
 0x58f   : > { %2081 = vmatmul.mubr.msk.f32.vlgmr.msra.gmra.mrb[12].mxu1 %vm417_vm2, %v1115_v33 }
 0x590   : > { %2083 = vmatprep.mubr.msk.f32.mxu1 %vm417_vm2, %v1116_v34 }
 0x593   : > { %2084 = vmatmul.mubr.msk.f32.gmra.mrb[14].mxu1 %vm417_vm2, %v1117_v35 }
 0x594   : > { %2108 = vmatprep.mubr.msk.f32.mxu1 %vm417_vm2, %v1357_v54 }
 0x662   : > { %v2082_v41 = vpop.f32.mrb[12].mxu1 }
 0x663   : > { %v1218_v42 = vadd.f32 %v2082_v41, %v1124_v40  ;;  %v1212_v43 = vpop.f32.mrb[13].mxu1 }
 0x664   : > { %v1213_v44 = vadd.f32 %v1212_v43, %v1120_v38 }
 0x665   : > { %v1232_v45 = vmax.f32 %v1218_v42, 0.0  ;;  %v2382_v42 = vmov 683565275  }
 0x666   : > { %v1231_v7 = vmax.f32 %v1213_v44, 0.0  ;;  %v2085_v47 = vpop.f32.mrb[14].mxu1  ;;  %v2383_v44 = vmov 2475754826  }
 0x667   : > { %v1228_v5 = vadd.f32 %v2085_v47, %v1132_v46  ;;  %v1222_v48 = vpop.f32.mrb[15].mxu1 }
 0x668   : > { %v2159_v6 = vpack.c.bf16 %v1232_v45, %v1231_v7  ;;  %v1223_v49 = vadd.f32 %v1222_v48, %v1128_v39  ;;  %v2384_v7 = vmov 2131351028   ;;  %v2385_v48 = vmov 2102212464  }
 0x669   : > { %v1234_v9 = vmax.f32 %v1228_v5, 0.0 }
 0x66a   : > { %v1233_v50 = vmax.f32 %v1223_v49, 0.0  ;;  %2160 = vmatprep.subr.bf16.mxu0 %v2159_v6 }
 0x66b   : > { %2162 = vmatpush3.bf16.msra.mxu0 %v2159_v6 }
 0x66c   : > { %v2163_v0 = vpack.c.bf16 %v1234_v9, %v1233_v50  ;;  %v2386_v9 = vmov 920167782  }
 0x66e   : > { %2164 = vmatprep.subr.bf16.mxu0 %v2163_v0 }
 0x66f   : > { %2166 = vmatpush3.bf16.msra.mxu0 %v2163_v0 }
 0x672   : > { %2095 = vmatmul.mubr.msk.f32.vlgmr.msra.gmra.mrb[12].mxu0 %vm417_vm2, %v1237_v51  ;;  %v2387_v51 = vmov 1326507024  }
 0x673   : > { %2097 = vmatprep.mubr.msk.f32.mxu0 %vm417_vm2, %v1238_v52 }
 0x676   : > { %2098 = vmatmul.mubr.msk.f32.gmra.mrb[14].mxu0 %vm417_vm2, %v1239_v53 }
 0x745   : > { %v2096_v59 = vpop.f32.mrb[12].mxu0 }
 0x746   : > { %v1340_v60 = vadd.f32 %v2096_v59, %v1246_v58  ;;  %v1334_v61 = vpop.f32.mrb[13].mxu0 }
 0x747   : > { %v1335_v62 = vadd.f32 %v1334_v61, %v1242_v57 }
 0x748   : > { %v1354_v63 = vmax.f32 %v1340_v60, 0.0 }
 0x749   : > { %v1353_v3 = vmax.f32 %v1335_v62, 0.0  ;;  %v2099_v4 = vpop.f32.mrb[14].mxu0 }
 0x74a   : > { %v1350_v10 = vadd.f32 %v2099_v4, %v1254_v2  ;;  %v1344_v11 = vpop.f32.mrb[15].mxu0 }
 0x74b   : > { %v2167_v12 = vpack.c.bf16 %v1354_v63, %v1353_v3  ;;  %v1345_v13 = vadd.f32 %v1344_v11, %v1250_v8 }
 0x74c   : > { %v1356_v14 = vmax.f32 %v1350_v10, 0.0 }
 0x74d   : > { %v1355_v15 = vmax.f32 %v1345_v13, 0.0  ;;  %2168 = vmatprep.subr.bf16.mxu1 %v2167_v12 }
 0x74e   : > { %2170 = vmatpush3.bf16.msra.mxu1 %v2167_v12 }
 0x74f   : > { %v2171_v16 = vpack.c.bf16 %v1356_v14, %v1355_v15 }
 0x751   : > { %2172 = vmatprep.subr.bf16.mxu1 %v2171_v16 }
 0x752   : > { %2174 = vmatpush3.bf16.msra.mxu1 %v2171_v16 }
 0x755   : > { %2109 = vmatmul.mubr.msk.f32.vlgmr.msra.gmra.mrb[16].mxu1 %vm417_vm2, %v1358_v17 }
 0x828   : > { %v2652_v19 = vpop.f32.mrb[16].mxu1 }
 0x829   : > { %v1443_v20 = vpop.f32.mrb[17].mxu1 }
 0x82a   : > { %v2654_v21 = vadd.f32 %v1443_v20, %v1364_v18 }
 0x82c   : > { %v1452_v22 = vmul.f32 %v2654_v21, %v2654_v21 }
 0x82e   : > { %v1454_v23 = vrot.slane %v1452_v22, 1  ;;  %v1457_v25 = vrot.slane %v1452_v22, 2 }
 0x830   : > { %v1456_v24 = vadd.f32 %v1454_v23, %v1452_v22 }
 0x832   : > { %v1459_v26 = vadd.f32 %v1457_v25, %v1456_v24 }
 0x834   : > { %2267 = vrsqrt.f32 %v1459_v26  ;;  %vm1462_vm3 = vcmp.eq.f32.partialorder %v1459_v26, inf  ;;  %v1465_v29 = vand.u32 2147483648, %v1459_v26  ;;  %vm1464_vm4 = vcmp.eq.f32.partialorder %v1459_v26, 0.0 }
 0x83e   : > { %v2268_v27 = vpop.eup %2267 }
 0x83f   : > { %v1461_v28 = vmul.f32 %v2268_v27, %v1459_v26 }
 0x841   : > { %v1463_v30 = vsel %vm1462_vm3, %v1459_v26, %v1461_v28 }
 0x842   : > { %v2658_v31 = vsel %vm1464_vm4, %v1465_v29, %v1463_v30 }
 0x843   : > { %v1471_v32 = vand.u32 2139095040, %v2658_v31  ;;  %v1468_v36 = vand.u32 2147483647, %v2658_v31  ;;  %vm1470_vm12 = vcmp.lt.s32.totalorder %v2658_v31, 0  ;;  %vm1560_vm1 = vweird.f32 %v2658_v31 }
 0x845   : > { %v1472_v33 = vshrl.u32 %v1471_v32, 23  ;;  %v1475_v39 = vand.u32 8388607, %v1468_v36  ;;  %vm1469_vm13 = vcmp.le.f32.partialorder %v1468_v36, 0.7853982 }
 0x847   : > { %v1902_v34 = vadd.s32 4294967169, %v1472_v33  ;;  %v1476_v53 = vor.u32 8388608, %v1475_v39 }
 0x849   : > { %v1478_v35 = vadd.s32 1, %v1902_v34  ;;  %v1516_v8 = vshll.u32 %v1476_v53, 8 }
 0x84b   : > { %vm1479_vm5 = vcmp.gt.s32.totalorder %v1478_v35, 0 }
 0x84c   : > { %v1480_v37 = vsel %vm1479_vm5, %v1478_v35, 0  ;;  %vm1734_vm5 = vcmask 1040384  }
 0x84d   : > { %v1482_v38 = vand.u32 31, %v1480_v37  ;;  %v1481_v41 = vshrl.u32 %v1480_v37, 5 }
 0x84f   : > { %v1483_v40 = vsub.s32 32, %v1482_v38  ;;  %v1485_v43 = vshll.u32 %v2382_v42, %v1482_v38  ;;  %v1488_v45 = vshll.u32 %v2383_v44, %v1482_v38  ;;  %v1491_v5 = vshll.u32 %v2384_v7, %v1482_v38 }
 0x850   : > { %v1494_v49 = vshll.u32 %v2385_v48, %v1482_v38  ;;  %v1497_v0 = vshll.u32 %v2386_v9, %v1482_v38  ;;  %vm1500_vm6 = vcmp.lt.s32.totalorder %v1481_v41, 1  ;;  %vm1503_vm7 = vcmp.lt.s32.totalorder %v1481_v41, 4 }
 0x851   : > { %v1486_v46 = vshrl.u32 %v2383_v44, %v1483_v40  ;;  %v1489_v47 = vshrl.u32 %v2384_v7, %v1483_v40  ;;  %v1492_v6 = vshrl.u32 %v2385_v48, %v1483_v40  ;;  %v1495_v50 = vshrl.u32 %v2386_v9, %v1483_v40 }
 0x852   : > { %v1498_v52 = vshrl.u32 %v2387_v51, %v1483_v40  ;;  %v1484_v62 = vshrl.u32 %v2382_v42, %v1483_v40  ;;  %vm1502_vm8 = vcmp.lt.s32.totalorder %v1481_v41, 3  ;;  %vm1501_vm9 = vcmp.lt.s32.totalorder %v1481_v41, 2 }
 0x853   : > { %v1487_v54 = vor.u32 %v1486_v46, %v1485_v43  ;;  %v1490_v55 = vor.u32 %v1489_v47, %v1488_v45  ;;  %v1493_v56 = vor.u32 %v1492_v6, %v1491_v5  ;;  %v1496_v57 = vor.u32 %v1495_v50, %v1494_v49 }
 0x854   : > { %v1499_v58 = vor.u32 %v1498_v52, %v1497_v0  ;;  %v1467_v50 = vmax.f32 %v2658_v31, 1e-08  ;;  %v1677_v52 = vlaneseq }
 0x855   : > { %v1505_v59 = vsel %vm1503_vm7, %v1493_v56, 2102212464  ;;  %v1508_v60 = vsel %vm1500_vm6, %v1487_v54, %v1490_v55  ;;  %v1512_v61 = vsel %vm1500_vm6, %v1490_v55, %v1493_v56  ;;  %v1509_v63 = vsel %vm1503_vm7, %v1496_v57, 920167782 }
 0x856   : > { %v1513_v2 = vsel %vm1503_vm7, %v1499_v58, 1326507024  ;;  %v1510_v3 = vsel %vm1502_vm8, %v1493_v56, %v1509_v63  ;;  %v1504_v10 = vsel %vm1500_vm6, %v1484_v62, %v1487_v54  ;;  %v1506_v11 = vsel %vm1502_vm8, %v1490_v55, %v1505_v59 }
 0x857   : > { %v1514_v4 = vsel %vm1502_vm8, %v1496_v57, %v1513_v2  ;;  %v1511_v12 = vsel %vm1501_vm9, %v1508_v60, %v1510_v3  ;;  %v1507_v18 = vsel %vm1501_vm9, %v1504_v10, %v1506_v11  ;;  %v1678_v57 = vshrl.u32 %v1677_v52, 7 }
 0x858   : > { %v1515_v13 = vsel %vm1501_vm9, %v1512_v61, %v1514_v4  ;;  %v2667_v16 = vmul.u32.u64.low %v1516_v8, %v1511_v12  ;;  %v2668_v17 = vmul.u32.u64.high %v1516_v8, %v1511_v12, %v2667_v16  ;;  %v1523_v22 = vmul.u32 %v1516_v8, %v1507_v18 }
 0x859   : > { %v2664_v14 = vmul.u32.u64.low %v1516_v8, %v1515_v13  ;;  %v2665_v15 = vmul.u32.u64.high %v1516_v8, %v1515_v13, %v2664_v14  ;;  %v1683_v58 = vrot.slane %v2654_v21, 3  ;;  %v1679_v2 = vsub.s32 0, %v1678_v57 }
 0x85a   : > { %v1526_v20 = vadd.s32 1, %v2668_v17  ;;  %vm1736_vm6 = vcmask 1041408  }
 0x85b   : > { %vm1525_vm10 = vc.u32 %v2665_v15, %v2667_v16  ;;  %v1524_v35 = vadd.s32 %v2667_v16, %v2665_v15  ;;  %v1685_v3 = vsub.f32 %v2514_v1, %v1683_v58 }
 0x85c   : > { %v1527_v23 = vsel %vm1525_vm10, %v1526_v20, %v2668_v17 }
 0x85d   : > { %v1528_v24 = vadd.s32 %v1527_v23, %v1523_v22  ;;  %v1690_v11 = vrot.slane %v1685_v3, 7  ;;  %v1700_v12 = vrot.slane %v1685_v3, 2  ;;  %v1687_v13 = vrot.slane %v1685_v3, 1 }
 0x85e   : > { %v1697_v14 = vrot.slane %v1685_v3, 6 }
 0x85f   : > { %v1529_v25 = vadd.s32 536870912, %v1528_v24 }
 0x861   : > { %v1530_v26 = vshrl.u32 %v1529_v25, 30 }
 0x863   : > { %v1531_v27 = vshll.u32 %v1530_v26, 30  ;;  %v1554_v47 = vsub.s32 4, %v1530_v26 }
 0x865   : > { %v1532_v28 = vsub.s32 %v1528_v24, %v1531_v27  ;;  %v1555_v6 = vsel %vm1470_vm12, %v1554_v47, %v1530_v26 }
 0x866   : > { %v1557_v9 = vsel %vm1469_vm13, 0, %v1555_v6 }
 0x867   : > { %v1534_v29 = vsub.s32 0, %v1532_v28  ;;  %v1561_v0 = vadd.s32 3, %v1557_v9  ;;  %v1667_v4 = vand.u32 3, %v1557_v9 }
 0x869   : > { %v1903_v30 = vmin.u32 %v1534_v29, %v1532_v28  ;;  %v1562_v51 = vand.u32 3, %v1561_v0  ;;  %vm1669_vm2 = vcmp.eq.s32.totalorder %v1667_v4, 0  ;;  %vm1672_vm3 = vcmp.eq.s32.totalorder %v1667_v4, 2 }
 0x86a   : > { %vm1668_vm4 = vcmp.lt.s32.totalorder %v1667_v4, 2 }
 0x86b   : > { %v1536_v32 = vclz %v1903_v30  ;;  %vm1567_vm14 = vcmp.eq.s32.totalorder %v1562_v51, 2  ;;  %vm1564_vm15 = vcmp.eq.s32.totalorder %v1562_v51, 0  ;;  %vm1563_vm0 = vcmp.lt.s32.totalorder %v1562_v51, 2 }
 0x86d   : > { %v1904_v33 = vadd.s32 4294967294, %v1536_v32 }
 0x86f   : > { %vm1905_vm11 = vcmp.lt.s32.totalorder %v1904_v33, 0 }
 0x870   : > { %v1539_v34 = vsel %vm1905_vm11, 0, %v1904_v33 }
 0x871   : > { %v1540_v37 = vsub.s32 32, %v1539_v34  ;;  %v1544_v38 = vsub.s32 4294967266, %v1539_v34  ;;  %v1541_v39 = vshll.u32 %v1532_v28, %v1539_v34 }
 0x873   : > { %v1542_v40 = vshrl.u32 %v1524_v35, %v1540_v37  ;;  %v1545_v41 = vadd.s32 127, %v1544_v38 }
 0x875   : > { %v1543_v42 = vor.u32 %v1542_v40, %v1541_v39  ;;  %v1546_v43 = vshll.u32 %v1545_v41, 23 }
 0x877   : > { %v1547_v44 = vor.u32 4788187, %v1546_v43  ;;  %v1550_v46 = vcvt.s32.f32 %v1543_v42 }
 0x879   : > { %v1548_v45 = vand.u32 2147483647, %v1547_v44 }
 0x87b   : > { %v1551_v7 = vmul.f32 %v1550_v46, %v1548_v45 }
 0x87d   : > { %v1552_v5 = vxor.u32 2147483648, %v1551_v7 }
 0x87f   : > { %v1553_v48 = vsel %vm1470_vm12, %v1552_v5, %v1551_v7  ;;  %v1369_v7 = vpop.permute.xlu0 %1368 }
 0x880   : > { %v1556_v49 = vsel %vm1469_vm13, %v2658_v31, %v1553_v48  ;;  %v1449_v9 = vadd.f32 %v2652_v19, %v1369_v7 }
 0x881   : > { %2269 = vcosq.f32 %v1556_v49 }
 0x882   : > { %2271 = vsinq.f32 %v1556_v49  ;;  %v1760_v52 = vrot.slane %v1449_v9, 6 }
 0x883   : > { %2273 = vrcp.f32 %v1467_v50 }
 0x88b   : > { %v2270_v53 = vpop.eup %2269 }
 0x88c   : > { %v2272_v54 = vpop.eup %2271  ;;  %v1568_v55 = vxor.u32 2147483648, %v2270_v53 }
 0x88d   : > { %v1565_v56 = vxor.u32 2147483648, %v2272_v54  ;;  %v2274_v61 = vpop.eup %2273 }
 0x88e   : > { %v1569_v36 = vsel %vm1567_vm14, %v1568_v55, %v2272_v54  ;;  %v1674_v18 = vsel %vm1672_vm3, %v1568_v55, %v2272_v54 }
 0x88f   : > { %v1566_v59 = vsel %vm1564_vm15, %v2270_v53, %v1565_v56  ;;  %v1671_v17 = vsel %vm1669_vm2, %v2270_v53, %v1565_v56  ;;  %v1759_v53 = vrot.slane %v2654_v21, 6 }
 0x890   : > { %v1570_v60 = vsel %vm1563_vm0, %v1566_v59, %v1569_v36  ;;  %v1675_v26 = vsel %vm1668_vm4, %v1671_v17, %v1674_v18 }
 0x891   : > { %v1571_v62 = vsel %vm1560_vm1, nan, %v1570_v60  ;;  %v1676_v40 = vsel %vm1560_vm1, nan, %v1675_v26  ;;  %v1761_v56 = vsel %vm1736_vm6, %v1759_v53, %v1760_v52 }
 0x892   : > { %v1573_v63 = vmul.f32 %v2274_v61, %v1571_v62  ;;  %v1752_v48 = vrot.slane %v1676_v40, %v1679_v2 }
 0x894   : > { %v1680_v8 = vrot.slane %v1573_v63, %v1679_v2 }
 0x896   : > { %v1681_v10 = vmul.f32 %v1680_v8, %v2654_v21 }
 0x898   : > { %v1692_v15 = vmul.f32 %v1690_v11, %v1681_v10  ;;  %v1702_v16 = vmul.f32 %v1700_v12, %v1681_v10  ;;  %v1689_v20 = vmul.f32 %v1687_v13, %v1681_v10  ;;  %v1699_v23 = vmul.f32 %v1697_v14, %v1681_v10 }
 0x89a   : > { %v1694_v22 = vrot.slane %v1692_v15, 1  ;;  %v1704_v24 = vrot.slane %v1702_v16, 6 }
 0x89c   : > { %v1696_v1 = vsub.f32 %v1689_v20, %v1694_v22  ;;  %v1706_v25 = vsub.f32 %v1699_v23, %v1704_v24 }
 0x89e   : > { %v1708_v27 = vrot.slane %v1696_v1, 7  ;;  %v1711_v28 = vmul.f32 %v1706_v25, %v1681_v10  ;;  %v1716_v29 = vmul.f32 %v1696_v1, %v1681_v10  ;;  %v1722_v30 = vrot.slane %v1706_v25, 2 }
 0x89f   : > { %v1728_v32 = vrot.slane %v1696_v1, 1  ;;  %v1730_v33 = vrot.slane %v1706_v25, 1  ;;  %v1732_v34 = vrot.slane %v1696_v1, 6 }
 0x8a0   : > { %v1710_v35 = vmul.f32 %v1708_v27, %v1681_v10  ;;  %v1713_v37 = vrot.slane %v1711_v28, 1  ;;  %v1718_v38 = vrot.slane %v1716_v29, 6  ;;  %v1724_v39 = vmul.f32 %v1722_v30, %v1681_v10 }
 0x8a1   : > { %v1725_v41 = vrot.slane %v1716_v29, 1  ;;  %v1735_v42 = vsel %vm1734_vm5, %v1728_v32, %v1730_v33 }
 0x8a2   : > { %v1715_v43 = vsub.f32 %v1710_v35, %v1713_v37  ;;  %v1720_v44 = vsub.f32 %v1710_v35, %v1718_v38  ;;  %v1737_v46 = vsel %vm1736_vm6, %v1735_v42, %v1732_v34 }
 0x8a3   : > { %v1727_v45 = vsub.f32 %v1724_v39, %v1725_v41  ;;  %v1753_v31 = vmul.f32 %v1752_v48, %v1737_v46 }
 0x8a4   : > { %v1739_v47 = vrot.slane %v1715_v43, 1  ;;  %v1742_v5 = vrot.slane %v1720_v44, 1 }
 0x8a5   : > { %v1745_v6 = vrot.slane %v1727_v45, 6 }
 0x8a6   : > { %v1747_v49 = vsel %vm1734_vm5, %v1739_v47, %v1742_v5 }
 0x8a7   : > { %v1748_v50 = vsel %vm1736_vm6, %v1747_v49, %v1745_v6 }
 0x8a8   : > { %v1754_v0 = vadd.f32 %v1753_v31, %v1748_v50 }
 0x8aa   : > { %v1755_v51 = vmul.f32 2.0, %v1754_v0 }
 0x8ac   : > { %v1756_v54 = vadd.f32 %v1755_v51, %v1685_v3 }
 0x8ae   : > { %v1757_v55 = vadd.f32 %v1756_v54, %v1683_v58 }
 0x8b0   : > { %v1763_v36 = vadd.f32 %v1761_v56, %v1757_v55 }
 0x8b2   : > { %1764 = vst [vmem:[%s257_s20] sm:$0x7] %v1763_v36 }
 0x8b3   : > { %2316 = shalt.err (!%p2313_p7)
}
 0x8b4   : > { %s2317_s9 = scalar_lea.hbm %s2703_s10, 64  ;;  %s2321_s17 = scalar_lea.hbm %s2751_s6, 128 }
 0x8b5   : > { %p2318_p8 = scmp.ne.s32.totalorder %s2703_s10, %s2317_s9  ;;  %p2322_p1 = scmp.lt.u32.totalorder %s2703_s10, %s2751_s6 }
 0x8b6   : > { %p2323_p0 = scmp.lt.u32.totalorder %s2321_s17, %s2317_s9  ;;  %p2325_p6 = scmp.lt.u32.totalorder %s2317_s9, %s2703_s10 }
 0x8b7   : > { %p2319_p11 = pnand %p2318_p8, %p2762_p9 }
 0x8b8   : > { %p2324_p5 = por %p2323_p0, %p2322_p1 }
 0x8b9   : > { %p2320_p13 = pneg %p2319_p11 }
 0x8ba   : > { %p2326_p10 = por %p2325_p6, %p2324_p5 }
 0x8bc   : > { %p2327_p12 = pnand %p2326_p10, %p2320_p13 }
 0x8be   : > { %2330 = shalt.err (!%p2327_p12)
}
 0x8bf   : > { %2187 = dma.vmem_to_hbm [thread:$0]  (%p2762_p9), %s2705_s26, 64, %s2703_s10, %s1766_s25  }
 0x8c0 PF: > { %p2199_p2 = scmp.ge.s32.totalorder %s2369_s24, 2  ;;  %s1791_s20 = sand.u32 1, %s2357_s21  }
 0x8c1   : > { %p2763_p3 = scmp.ne.s32.totalorder %s2756_s8, 0  ;;  %s1792_s28 = scalar_lea.sflag [#allocation4], %s1791_s20 }
 0x8c3   : > { %p2194_p4 = pnand %p2199_p2, %p2763_p3 }
 0x8c5   : > { %2352 = dma.done.wait (!%p2194_p4), %s1792_s28, 64  }
 0x8c6   : > { %2354 = vsyncadd (!%p2194_p4), %s1792_s28, 4294967232  ;;  %p17_p7 = scmp.ge.s32.totalorder %s2449_s27, 4   ;;  %s2764_s21 = smov %s2361_s22 }
 0x8c7   : > { %s2765_s22 = smov %s2365_s23  ;;  %s2766_s23 = smov %s2460_s30 }
 0x8c8   : > { %s2767_s24 = smov %s2449_s27  ;;  %19 = sbr.rel (!%p17_p7) target bundleno = 4 (0x4), region = 91 }
 0x8cf   :  { %1797 = vsyncpa [#allocation3], 1 }
 0x8d0   :  { %1799 = vsyncpa [#allocation3 + $0x1], 1 }
 0x8d1   :  { %1800 = vsyncpa [#allocation4], 1 }
 0x8d2   :  { %1802 = vsyncpa [#allocation4 + $0x1], 1 }

</bundles_post_ra>
